<compile_context>
chip_gen: v7x
topology: tpu7x:2x2x1
jax: 0.10.0
libtpu: 0.0.40
codegen_flags: <defaults>
</compile_context>

<pallas_src>
import numpy as np

import jax
import jax.numpy as jnp
from jax.experimental import pallas as pl
from jax.experimental.pallas import tpu as pltpu


def _round_up(v, m):
    return (v + m - 1) // m * m


# ------------------------------ Pallas kernel --------------------------------

def _batch_blur_kernel(x_ref, t_ref, o_ref):
    # x_ref: (1, C*Hq, Kp)  bf16  padded image rows of one batch element
    # t_ref: (1, Kp, l*W)   bf16  row-Toeplitz slab for this batch's blur kernel
    # o_ref: (1, C, H, W)   f32   output block
    C, H, W = o_ref.shape[1], o_ref.shape[2], o_ref.shape[3]
    Hq = x_ref.shape[1] // C
    l = t_ref.shape[2] // W

    # Horizontal pass: one MXU matmul, M = C*Hq (~128), K = Kp, N = l*W.
    hc = jnp.dot(x_ref[0], t_ref[0], preferred_element_type=jnp.float32)
    hc = hc.reshape(C, Hq, l * W)        # Hq is a multiple of 16 -> tile-aligned split

    # Vertical pass: l-term shift-and-add (static, unrolled; VPU/XLU-only work
    # on the small f32 result -- the old per-tap slicing of the full image is gone).
    acc = hc[:, 0:H, 0:W]
    for dy in range(1, l):
        acc = acc + hc[:, dy:dy + H, dy * W:(dy + 1) * W]
    o_ref[0] = acc.astype(o_ref.dtype)


# --------------------------------- wrapper -----------------------------------

_PAD_MODE = {
    "reflection": "reflect",
    "zero": "constant",
    "replication": "edge",
    "circular": "wrap",
}


def _pad_like_torch(x, l, padmode):
    """Matches BatchBlur's padding: symmetric for odd l, (p, p-1) for even l."""
    p = l // 2
    if l % 2 == 1:
        hw_pad = ((p, p), (p, p))
    else:
        hw_pad = ((p, p - 1), (p, p - 1))
    return jnp.pad(x, ((0, 0), (0, 0)) + hw_pad, mode=_PAD_MODE[padmode])


def batch_blur(x, kernel, l=15, padmode="reflection"):
    """Pallas TPU implementation of BatchBlur.forward.

    x:      (B, C, H, W) float32
    kernel: (l, l) shared blur kernel  OR  (B, l, l) per-batch blur kernels
    """
    B, C, H, W = x.shape
    padded = _pad_like_torch(x, l, padmode)              # (B, C, Hp, Wp) f32
    Hp, Wp = padded.shape[-2:]

    per_batch = kernel.ndim == 3
    k = kernel.astype(jnp.float32).reshape((-1, l, l))   # (1, l, l) or (B, l, l)
    KB = k.shape[0]

    # Sublane-tile alignment for the bf16 MXU operands (avoid ragged tiles);
    # only go to full 128-lane K rounding once Wp is already >= 128 so the toy
    # sizes don't pay a ~4x DMA inflation on the dominant operands.
    Hq = _round_up(Hp, 16)
    Kp = _round_up(Wp, 128) if Wp >= 128 else _round_up(Wp, 16)

    # LHS: padded image, per-channel rows padded to Hq, columns to Kp, bf16.
    x_lhs = jnp.pad(padded, ((0, 0), (0, 0), (0, Hq - Hp), (0, Kp - Wp)))
    x_lhs = x_lhs.astype(jnp.bfloat16).reshape(B, C * Hq, Kp)

    # RHS: small banded row-Toeplitz slab  T[b, r, dy*W + x] = k[b, dy, r - x].
    # Built from a static one-hot shift tensor; O(l*Wp*W) work/bytes only.
    shift_w = np.zeros((l, Wp, W), np.float32)
    for dx in range(l):
        for xx in range(W):
            shift_w[dx, xx + dx, xx] = 1.0
    toep = jnp.einsum("bde,ers->brds", k, jnp.asarray(shift_w))   # (KB, Wp, l, W)
    toep = toep.reshape(KB, Wp, l * W)
    toep = jnp.pad(toep, ((0, 0), (0, Kp - Wp), (0, 0))).astype(jnp.bfloat16)

    t_index = (lambda b: (b, 0, 0)) if per_batch else (lambda b: (0, 0, 0))

    out_dt = x.dtype
    # Explicit VMEM budget: double-buffered blocks + f32 matmul result + slack.
    block_bytes = 2 * (C * Hq * Kp * 2 + Kp * l * W * 2
                       + C * H * W * jnp.dtype(out_dt).itemsize)
    scratch_bytes = 4 * (C * Hq * l * W * 4)
    vmem_limit = int(min(64 << 20, max(8 << 20, block_bytes + scratch_bytes)))

    out = pl.pallas_call(
        _batch_blur_kernel,
        out_shape=jax.ShapeDtypeStruct((B, C, H, W), out_dt),
        grid_spec=pltpu.PrefetchScalarGridSpec(
            num_scalar_prefetch=0,
            grid=(B,),
            in_specs=[
                pl.BlockSpec((1, C * Hq, Kp), lambda b: (b, 0, 0)),
                pl.BlockSpec((1, Kp, l * W), t_index),
            ],
            out_specs=pl.BlockSpec((1, C, H, W), lambda b: (b, 0, 0, 0)),
        ),
        compiler_params=pltpu.CompilerParams(
            dimension_semantics=("parallel",),
            vmem_limit_bytes=vmem_limit,
        ),
    )(x_lhs, toep)

    return out


# ------------------------------ pure-JAX reference ----------------------------

def _reference_blur(x, kernel, l=15, padmode="reflection"):
    B, C, H, W = x.shape
    padded = _pad_like_torch(x, l, padmode)
    k = kernel.astype(jnp.float32)
    if k.ndim == 2:
        k = jnp.broadcast_to(k, (B, l, l))
    out = jnp.zeros((B, C, H, W), jnp.float32)
    for dy in range(l):
        for dx in range(l):
            out = out + k[:, dy, dx][:, None, None, None] * padded[:, :, dy:dy + H, dx:dx + W]
    return out


# ------------------------------------ main ------------------------------------

if __name__ == "__main__":
    B, C, H, W, l = 2, 4, 16, 16, 15

    key = jax.random.PRNGKey(0)
    kx, k2, k3 = jax.random.split(key, 3)

    x = jax.random.normal(kx, (B, C, H, W), jnp.float32)

    # Shared 2-D blur kernel and per-batch 3-D blur kernels (both normalized).
    k_shared = jax.random.uniform(k2, (l, l), jnp.float32)
    k_shared = k_shared / jnp.sum(k_shared)
    k_batch = jax.random.uniform(k3, (B, l, l), jnp.float32)
    k_batch = k_batch / jnp.sum(k_batch, axis=(1, 2), keepdims=True)

    blur = jax.jit(batch_blur, static_argnames=("l", "padmode"))
    ref = jax.jit(_reference_blur, static_argnames=("l", "padmode"))

    out_shared = blur(x, k_shared)            # kernel.ndim == 2 branch
    out_batch = blur(x, k_batch)              # kernel.ndim == 3 branch
    jax.block_until_ready(out_shared)
    jax.block_until_ready(out_batch)

    ref_shared = ref(x, k_shared)
    ref_batch = ref(x, k_batch)

    assert out_shared.shape == (B, C, H, W)
    assert out_batch.shape == (B, C, H, W)
    assert bool(jnp.all(jnp.isfinite(out_shared)))
    assert bool(jnp.all(jnp.isfinite(out_batch)))
    assert bool(jnp.allclose(out_shared, ref_shared, rtol=0.0, atol=5e-3))
    assert bool(jnp.allclose(out_batch, ref_batch, rtol=0.0, atol=5e-3))

    print("KERNEL_OK")
</pallas_src>

<mosaic_0001>
module attributes {stable_mosaic.version = 11 : i64} {
  func.func @_batch_blur_kernel(%arg0: i32, %arg1: memref<1x128x32xbf16, #tpu.memory_space<vmem>>, %arg2: memref<1x32x240xbf16, #tpu.memory_space<vmem>>, %arg3: memref<1x4x16x16xf32, #tpu.memory_space<vmem>>) attributes {dimension_semantics = [#tpu.dimension_semantics<parallel>], iteration_bounds = array<i64: 2>, scalar_prefetch = 0 : i64, scratch_operands = 0 : i64, tpu.core_type = #tpu.core_type<tc>, window_params = [{transform_indices = @transform_0, window_bounds = array<i64: 1, 128, 32>}, {pipeline_mode = #tpu.pipeline_mode<synchronous>, transform_indices = @transform_1, window_bounds = array<i64: 1, 32, 240>}, {transform_indices = @transform_2, window_bounds = array<i64: 1, 4, 16, 16>}]} {
    %c0 = arith.constant 0 : index
    %c0_0 = arith.constant 0 : index
    %c0_1 = arith.constant 0 : index
    %0 = vector.load %arg1[%c0, %c0_0, %c0_1] : memref<1x128x32xbf16, #tpu.memory_space<vmem>>, vector<1x128x32xbf16>
    %1 = vector.shape_cast %0 : vector<1x128x32xbf16> to vector<128x32xbf16>
    %c0_2 = arith.constant 0 : index
    %c0_3 = arith.constant 0 : index
    %c0_4 = arith.constant 0 : index
    %2 = vector.load %arg2[%c0_2, %c0_3, %c0_4] : memref<1x32x240xbf16, #tpu.memory_space<vmem>>, vector<1x32x240xbf16>
    %3 = vector.shape_cast %2 : vector<1x32x240xbf16> to vector<32x240xbf16>
    %cst = arith.constant dense<0.000000e+00> : vector<128x240xf32>
    %4 = tpu.matmul %1, %3, %cst {dimension_numbers = #tpu.dot_dimension_numbers<[1], [0], [0], [1], [0, 0, 1, 1], [], []>} : vector<128x32xbf16>, vector<32x240xbf16>, vector<128x240xf32> -> vector<128x240xf32>
    %5 = vector.shape_cast %4 : vector<128x240xf32> to vector<4x32x240xf32>
    %6 = vector.extract_strided_slice %5 {offsets = [0, 0, 0], sizes = [4, 16, 16], strides = [1, 1, 1]} : vector<4x32x240xf32> to vector<4x16x16xf32>
    %7 = vector.extract_strided_slice %5 {offsets = [0, 1, 16], sizes = [4, 16, 16], strides = [1, 1, 1]} : vector<4x32x240xf32> to vector<4x16x16xf32>
    %8 = arith.addf %6, %7 : vector<4x16x16xf32>
    %9 = vector.extract_strided_slice %5 {offsets = [0, 2, 32], sizes = [4, 16, 16], strides = [1, 1, 1]} : vector<4x32x240xf32> to vector<4x16x16xf32>
    %10 = arith.addf %8, %9 : vector<4x16x16xf32>
    %11 = vector.extract_strided_slice %5 {offsets = [0, 3, 48], sizes = [4, 16, 16], strides = [1, 1, 1]} : vector<4x32x240xf32> to vector<4x16x16xf32>
    %12 = arith.addf %10, %11 : vector<4x16x16xf32>
    %13 = vector.extract_strided_slice %5 {offsets = [0, 4, 64], sizes = [4, 16, 16], strides = [1, 1, 1]} : vector<4x32x240xf32> to vector<4x16x16xf32>
    %14 = arith.addf %12, %13 : vector<4x16x16xf32>
    %15 = vector.extract_strided_slice %5 {offsets = [0, 5, 80], sizes = [4, 16, 16], strides = [1, 1, 1]} : vector<4x32x240xf32> to vector<4x16x16xf32>
    %16 = arith.addf %14, %15 : vector<4x16x16xf32>
    %17 = vector.extract_strided_slice %5 {offsets = [0, 6, 96], sizes = [4, 16, 16], strides = [1, 1, 1]} : vector<4x32x240xf32> to vector<4x16x16xf32>
    %18 = arith.addf %16, %17 : vector<4x16x16xf32>
    %19 = vector.extract_strided_slice %5 {offsets = [0, 7, 112], sizes = [4, 16, 16], strides = [1, 1, 1]} : vector<4x32x240xf32> to vector<4x16x16xf32>
    %20 = arith.addf %18, %19 : vector<4x16x16xf32>
    %21 = vector.extract_strided_slice %5 {offsets = [0, 8, 128], sizes = [4, 16, 16], strides = [1, 1, 1]} : vector<4x32x240xf32> to vector<4x16x16xf32>
    %22 = arith.addf %20, %21 : vector<4x16x16xf32>
    %23 = vector.extract_strided_slice %5 {offsets = [0, 9, 144], sizes = [4, 16, 16], strides = [1, 1, 1]} : vector<4x32x240xf32> to vector<4x16x16xf32>
    %24 = arith.addf %22, %23 : vector<4x16x16xf32>
    %25 = vector.extract_strided_slice %5 {offsets = [0, 10, 160], sizes = [4, 16, 16], strides = [1, 1, 1]} : vector<4x32x240xf32> to vector<4x16x16xf32>
    %26 = arith.addf %24, %25 : vector<4x16x16xf32>
    %27 = vector.extract_strided_slice %5 {offsets = [0, 11, 176], sizes = [4, 16, 16], strides = [1, 1, 1]} : vector<4x32x240xf32> to vector<4x16x16xf32>
    %28 = arith.addf %26, %27 : vector<4x16x16xf32>
    %29 = vector.extract_strided_slice %5 {offsets = [0, 12, 192], sizes = [4, 16, 16], strides = [1, 1, 1]} : vector<4x32x240xf32> to vector<4x16x16xf32>
    %30 = arith.addf %28, %29 : vector<4x16x16xf32>
    %31 = vector.extract_strided_slice %5 {offsets = [0, 13, 208], sizes = [4, 16, 16], strides = [1, 1, 1]} : vector<4x32x240xf32> to vector<4x16x16xf32>
    %32 = arith.addf %30, %31 : vector<4x16x16xf32>
    %33 = vector.extract_strided_slice %5 {offsets = [0, 14, 224], sizes = [4, 16, 16], strides = [1, 1, 1]} : vector<4x32x240xf32> to vector<4x16x16xf32>
    %34 = arith.addf %32, %33 : vector<4x16x16xf32>
    %c0_5 = arith.constant 0 : index
    %c0_6 = arith.constant 0 : index
    %c0_7 = arith.constant 0 : index
    %c0_8 = arith.constant 0 : index
    %35 = vector.load %arg3[%c0_5, %c0_6, %c0_7, %c0_8] : memref<1x4x16x16xf32, #tpu.memory_space<vmem>>, vector<1x4x16x16xf32>
    %36 = vector.shape_cast %35 : vector<1x4x16x16xf32> to vector<4x16x16xf32>
    %37 = vector.shape_cast %34 : vector<4x16x16xf32> to vector<1x4x16x16xf32>
    tpu.vector_store %arg3[%c0_5, %c0_6, %c0_7, %c0_8], %37 {strides = array<i32>} : memref<1x4x16x16xf32, #tpu.memory_space<vmem>>, vector<1x4x16x16xf32>,
    return
  }
  func.func @transform_0(%arg0: i32) -> (i32, i32, i32) {
    %c0_i32 = arith.constant 0 : i32
    %c0_i32_0 = arith.constant 0 : i32
    %c0_i32_1 = arith.constant 0 : i32
    return %arg0, %c0_i32, %c0_i32_0 : i32, i32, i32
  }
  func.func @transform_1(%arg0: i32) -> (i32, i32, i32) {
    %c0_i32 = arith.constant 0 : i32
    %c0_i32_0 = arith.constant 0 : i32
    %c0_i32_1 = arith.constant 0 : i32
    %c0_i32_2 = arith.constant 0 : i32
    return %c0_i32, %c0_i32_0, %c0_i32_1 : i32, i32, i32
  }
  func.func @transform_2(%arg0: i32) -> (i32, i32, i32, i32) {
    %c0_i32 = arith.constant 0 : i32
    %c0_i32_0 = arith.constant 0 : i32
    %c0_i32_1 = arith.constant 0 : i32
    %c0_i32_2 = arith.constant 0 : i32
    return %arg0, %c0_i32, %c0_i32_0, %c0_i32_1 : i32, i32, i32, i32
  }
}

</mosaic_0001>

<bundles_post_ra>
// kernel: batch_blur.1
= control target key start
LH: loop header
LB: loop body
LE: loop exit
PB: predicated region body
PF: predicated region fallthrough
CT: control target
= control target key end

     0   :  { %7 = vsyncpa [#allocation3], 0  ;;  %s2216_s0 = inlined_call_operand.vmem [shape: bf16[2,128,32], index: 0, kind: input, shape index: {}]   ;;  %s2217_s1 = inlined_call_operand.vmem [shape: bf16[1,32,240], index: 1, kind: input, shape index: {}]   ;;  %s2218_s2 = inlined_call_operand.hbm [shape: f32[2,4,16,16], index: 2, kind: output, shape index: {}]  }
   0x1   :  { %9 = vsyncpa [#allocation3 + $0x1], 0  ;;  %s1344_s9 = smov 0   ;;  %s1346_s10 = smov 0  }
   0x2   :  { %s1348_s11 = smov 0   ;;  %s1350_s12 = smov 0  }
   0x3 LB: > { %s1365_s13 = sadd.s32 4294967295, %s1316_s12   ;;  %s1153_s14 = sadd.s32 4294967294, %s1316_s12   ;;  %s1316_s12 = sphi %s1350_s12, %s2311_s12   ;;  %s1312_s11 = sphi %s1348_s11, %s2310_s11   ;;  %s1308_s10 = sphi %s1346_s10, %s2309_s10   ;;  %s1304_s9 = sphi %s1344_s9, %s2308_s9  }
   0x4   : > { %s1369_s15 = sadd.s32 1, %s1316_s12   ;;  %s69_s16 = sadd.s32 1, %s1312_s11 }
   0x5   : > { %s66_s17 = ssub.s32 %s1316_s12, %s1369_s15  ;;  %p79_p0 = scmp.ne.s32.totalorder %s1312_s11, %s1308_s10 }
   0x6   : > { %p67_p1 = scmp.eq.s32.totalorder %s66_s17, 0  ;;  %p80_p2 = scmp.eq.s32.totalorder %s1365_s13, 1 }
   0x7   : > { %p85_p3 = scmp.ne.s32.totalorder %s1308_s10, %s1304_s9  ;;  %p86_p4 = scmp.eq.s32.totalorder %s1153_s14, 1 }
   0x8   : > { %s1380_s18 = scalar_select %p67_p1, %s1312_s11, %s69_s16  }
   0x9   : > { %p1382_p5 = por %p80_p2, %p79_p0  ;;  %p1386_p6 = por %p86_p4, %p85_p3 }
   0xa   : > { %p1156_p7 = scmp.ge.s32.totalorder %s1316_s12, 1  ;;  %p115_p8 = scmp.lt.s32.totalorder %s1316_s12, 3 }
   0xc   : > { %p116_p9 = pnand %p1156_p7, %p115_p8 }
   0xe   : > { %119 = sbr.rel (%p116_p9) target bundleno = 591 (0x24f), region = 28 }
  0x15   : > { %v1240_v0 = vld [vmem:[%s2217_s1 + $0x4] ss:$8 sps:$4 sm:$0xff]   ;;  %p137_p10 = scmp.lt.s32.totalorder %s1365_s13, 1  ;;  %v1242_v1 = vld [vmem:[%s2217_s1] ss:$8 sps:$4 sm:$0xff]   ;;  %v1318_v2 = vmov 0  }
  0x16   : > { %280 = vmatprep.mubr.bf16.mxu0 %v1318_v2  ;;  %316 = vmatprep.mubr.bf16.mxu1 %v1318_v2  ;;  %v1243_v3 = vld [vmem:[%s2217_s1 + $0x14] ss:$8 sps:$4 sm:$0xff]   ;;  %v1245_v4 = vld [vmem:[%s2217_s1 + $0x10] ss:$8 sps:$4 sm:$0xff]   ;;  %vm223_vm0 = vcmask 261120   ;;  %vm365_vm1 = vcmask 1046528  }
  0x17   : > { %248 = vmatprep.subr.bf16.mxu0 %v1240_v0  ;;  %1187 = vmatprep.subr.bf16.mxu1 %v1240_v0  ;;  %s138_s27 = scalar_select %p137_p10, %s1365_s13, 1  ;;  %vm418_vm2 = vcmask 1045504   ;;  %vm471_vm3 = vcmask 1044480   ;;  %vm524_vm4 = vcmask 1043456   ;;  %vm577_vm5 = vcmask 1042432  }
  0x18   : > { %249 = vmatpush1.bf16.msra.mxu0 %v1242_v1  ;;  %1189 = vmatpush1.bf16.msra.mxu1 %v1242_v1  ;;  %vm630_vm6 = vcmask 1041408   ;;  %s1319_s6 = smov 112   ;;  %vm683_vm7 = vcmask 1040384   ;;  %s1320_s7 = smov 96   ;;  %vm1068_vm8 = vcmask 130048  }
  0x19   : > { %250 = vmatprep.subr.bf16.mxu0 %v1243_v3  ;;  %1188 = vmatprep.subr.bf16.mxu1 %v1243_v3  ;;  %s1185_s30 = sshll.u32 %s138_s27, 6  ;;  %s1321_s8 = smov 80  }
  0x1a   : > { %s141_s5 = scalar_lea.vmem %s2216_s0, %s1185_s30  ;;  %s1322_s14 = smov 64  }
  0x1b   : > { %v1246_v5 = vld [vmem:[%s141_s5] sm:$0xff]   ;;  %v1248_v7 = vld [vmem:[%s141_s5 + $0x8] sm:$0xff]   ;;  %v1250_v9 = vld [vmem:[%s141_s5 + $0x10] sm:$0xff]   ;;  %s1323_s16 = smov 48   ;;  %s1324_s17 = smov 32  }
  0x1c   : > { %251 = vmatpush1.bf16.msra.mxu0 %v1245_v4  ;;  %1190 = vmatpush1.bf16.msra.mxu1 %v1245_v4  ;;  %v1247_v6 = vld [vmem:[%s141_s5 + $0x20] sm:$0xff]   ;;  %v1249_v8 = vld [vmem:[%s141_s5 + $0x28] sm:$0xff]   ;;  %v1251_v10 = vld [vmem:[%s141_s5 + $0x30] sm:$0xff]   ;;  %s1325_s21 = smov 16   ;;  %s134_s22 = sand.u32 1, %s1308_s10  }
  0x1d   : > { %v1252_v11 = vld [vmem:[%s141_s5 + $0x18] sm:$0xff]   ;;  %s1157_s23 = sshll.u32 %s134_s22, 6  ;;  %s1186_s25 = sshll.u32 %s1365_s13, 10 }
  0x1e   : > { %v1253_v12 = vld [vmem:[%s141_s5 + $0x38] sm:$0xff]   ;;  %s2138_s24 = scalar_lea.vmem [#allocation2], %s1157_s23  ;;  %s2167_s29 = scalar_lea.hbm %s2218_s2, %s1186_s25 }
  0x1f   : > { %1172 = vmatmul.mubr.msk.bf16.vlgmr.msra.gmra.mrb[0].mxu0 %vm223_vm0, %v1246_v5  ;;  %1176 = vmatmul.mubr.msk.bf16.vlgmr.msra.gmra.mrb[0].mxu1 %vm223_vm0, %v1247_v6  ;;  %s1091_s26 = sshll.u32 %s2138_s24, 4  ;;  %s2175_s13 = scalar_lea.sflag [#allocation3], %s134_s22  ;;  %s2169_s26 = int_to_ptr.vmem [resolvable:$true] %s1091_s26 }
  0x20   : > { %289 = vmatprep.mubr.bf16.mxu0 %v1318_v2  ;;  %325 = vmatprep.mubr.bf16.mxu1 %v1318_v2  ;;  %s1254_s30 = scalar_lea.vmem %s2169_s26, 1024  ;;  %s1326_s3 = smov [#allocation2]  }
  0x21   : > { %p1255_p11 = scmp.ne.s32.totalorder %s2169_s26, %s1254_s30  ;;  %s1258_s4 = sshll.u32 %s1326_s3, 4  ;;  %s1259_s4 = int_to_ptr.vmem [resolvable:$false] %s1258_s4 }
  0x22   : > { %s1260_s5 = scalar_lea.vmem %s1259_s4, 2048  ;;  %p1261_p0 = scmp.lt.s32.totalorder %s2169_s26, %s1259_s4 }
  0x23   : > { %p1256_p12 = pnand %p1255_p11, %p1382_p5  ;;  %p1262_p1 = scmp.lt.s32.totalorder %s1260_s5, %s1254_s30 }
  0x25   : > { %p1257_p13 = pneg %p1256_p12  ;;  %p1263_p2 = por %p1262_p1, %p1261_p0 }
  0x27   : > { %1173 = vmatmul.mubr.msk.bf16.gmra.mrb[4].mxu0 %vm223_vm0, %v1248_v7  ;;  %1177 = vmatmul.mubr.msk.bf16.gmra.mrb[4].mxu1 %vm223_vm0, %v1249_v8  ;;  %p1264_p3 = pnand %p1263_p2, %p1257_p13 }
  0x28   : > { %298 = vmatprep.mubr.bf16.mxu0 %v1318_v2  ;;  %334 = vmatprep.mubr.bf16.mxu1 %v1318_v2 }
  0x2f   : > { %1174 = vmatmul.mubr.msk.bf16.gmra.mrb[8].mxu0 %vm223_vm0, %v1250_v9  ;;  %1178 = vmatmul.mubr.msk.bf16.gmra.mrb[8].mxu1 %vm223_vm0, %v1251_v10 }
  0x30   : > { %307 = vmatprep.mubr.bf16.mxu0 %v1318_v2  ;;  %343 = vmatprep.mubr.bf16.mxu1 %v1318_v2 }
  0x37   : > { %1175 = vmatmul.mubr.msk.bf16.gmra.mrb[12].mxu0 %vm223_vm0, %v1252_v11  ;;  %1179 = vmatmul.mubr.msk.bf16.gmra.mrb[12].mxu1 %vm223_vm0, %v1253_v12 }
  0xf2   : > { %v1417_v13 = vpop.f32.mrb[0].mxu0  ;;  %v1419_v14 = vpop.f32.mrb[0].mxu1 }
  0xf3   : > { %2234 = vst [vmem:[#allocation5_spill] sm:$0xff] %v1417_v13  ;;  %2235 = vst [vmem:[#allocation6_spill] sm:$0xff] %v1419_v14  ;;  %v284_v15 = vpop.f32.mrb[1].mxu0  ;;  %v320_v16 = vpop.f32.mrb[1].mxu1  ;;  %v366_v17 = vrot.slane %v1417_v13, 1  ;;  %v376_v18 = vrot.slane %v1419_v14, 1 }
  0xf4   : > { %v419_v19 = vrot.slane %v1417_v13, 2  ;;  %v429_v20 = vrot.slane %v1419_v14, 2  ;;  %v1425_v21 = vpop.f32.mrb[2].mxu0  ;;  %v1427_v22 = vpop.f32.mrb[2].mxu1  ;;  %v472_v23 = vrot.slane %v1417_v13, 3  ;;  %v482_v24 = vrot.slane %v1419_v14, 3 }
  0xf5   : > { %2236 = vst [vmem:[#allocation7_spill] sm:$0xff] %v1425_v21  ;;  %2237 = vst [vmem:[#allocation8_spill] sm:$0xff] %v1427_v22  ;;  %v525_v25 = vrot.slane %v1417_v13, 4  ;;  %v535_v26 = vrot.slane %v1419_v14, 4  ;;  %v1433_v27 = vpop.f32.mrb[3].mxu1  ;;  %v1435_v28 = vpop.f32.mrb[3].mxu0 }
  0xf6   : > { %2238 = vst [vmem:[#allocation9_spill] sm:$0xff] %v1433_v27  ;;  %2239 = vst [vmem:[#allocation10_spill] sm:$0xff] %v1435_v28  ;;  %v367_v29 = vrot.slane %v1425_v21, 1  ;;  %v377_v30 = vrot.slane %v1427_v22, 1  ;;  %v420_v31 = vrot.slane %v1425_v21, 2  ;;  %v430_v32 = vrot.slane %v1427_v22, 2 }
  0xf7   : > { %v473_v33 = vrot.slane %v1425_v21, 3  ;;  %v483_v34 = vrot.slane %v1427_v22, 3  ;;  %v526_v35 = vrot.slane %v1425_v21, 4  ;;  %v536_v36 = vrot.slane %v1427_v22, 4 }
  0xf8   : > { %v368_v37 = vsel %vm365_vm1, %v366_v17, %v367_v29  ;;  %v378_v38 = vsel %vm365_vm1, %v376_v18, %v377_v30  ;;  %v421_v39 = vsel %vm418_vm2, %v419_v19, %v420_v31  ;;  %v1451_v40 = vsel %vm418_vm2, %v429_v20, %v430_v32 }
  0xf9   : > { %386 = vrot.lane.b32.xlu0 %v368_v37, %s1319_s6  ;;  %v1455_v41 = vsel %vm471_vm3, %v472_v23, %v473_v33  ;;  %v1458_v42 = vsel %vm471_vm3, %v482_v24, %v483_v34  ;;  %v1461_v43 = vsel %vm524_vm4, %v525_v25, %v526_v35  ;;  %v1464_v44 = vsel %vm524_vm4, %v535_v26, %v536_v36 }
  0xfa   : > { %v578_v45 = vrot.slane %v1417_v13, 5  ;;  %v579_v46 = vrot.slane %v1425_v21, 5  ;;  %v588_v47 = vrot.slane %v1419_v14, 5  ;;  %v589_v48 = vrot.slane %v1427_v22, 5  ;;  %v1470_v49 = vpop.f32.mrb[4].mxu0  ;;  %v327_v50 = vpop.f32.mrb[4].mxu1 }
  0xfb   : > { %v631_v51 = vrot.slane %v1417_v13, 6  ;;  %v632_v52 = vrot.slane %v1425_v21, 6  ;;  %v641_v53 = vrot.slane %v1419_v14, 6  ;;  %v642_v54 = vrot.slane %v1427_v22, 6  ;;  %v1476_v55 = vpop.f32.mrb[5].mxu0  ;;  %v1478_v56 = vpop.f32.mrb[5].mxu1 }
  0xfc   : > { %2240 = vst [vmem:[#allocation11_spill] sm:$0xff] %v1476_v55  ;;  %2241 = vst [vmem:[#allocation12_spill] sm:$0xff] %v1478_v56  ;;  %v379_v57 = vrot.slane %v327_v50, 1  ;;  %v422_v58 = vrot.slane %v1470_v49, 2  ;;  %v432_v59 = vrot.slane %v327_v50, 2  ;;  %v475_v60 = vrot.slane %v1470_v49, 3 }
  0xfd   : > { %v331_v61 = vpop.f32.mrb[6].mxu1  ;;  %394 = vrot.lane.b32.xlu0 %v378_v38, %s1319_s6  ;;  %v295_v62 = vpop.f32.mrb[6].mxu0  ;;  %v485_v63 = vrot.slane %v327_v50, 3  ;;  %v528_v0 = vrot.slane %v1470_v49, 4  ;;  %v538_v1 = vrot.slane %v327_v50, 4  ;;  %v1485_v2 = vsel %vm577_vm5, %v578_v45, %v579_v46 }
  0xfe   : > { %v1487_v3 = vpop.f32.mrb[7].mxu1  ;;  %v380_v4 = vsel %vm365_vm1, %v377_v30, %v379_v57  ;;  %v1490_v5 = vpop.f32.mrb[7].mxu0  ;;  %v423_v6 = vsel %vm418_vm2, %v420_v31, %v422_v58  ;;  %v433_v7 = vsel %vm418_vm2, %v430_v32, %v432_v59  ;;  %v1495_v8 = vsel %vm471_vm3, %v473_v33, %v475_v60 }
  0xff   : > { %396 = vrot.lane.b32.xlu1 %v380_v4, %s1319_s6  ;;  %v1499_v9 = vsel %vm471_vm3, %v483_v34, %v485_v63  ;;  %v1502_v10 = vsel %vm524_vm4, %v526_v35, %v528_v0  ;;  %v1505_v11 = vsel %vm524_vm4, %v536_v36, %v538_v1  ;;  %v581_v12 = vrot.slane %v1470_v49, 5 }
 0x100   : > { %v1509_v15 = vsel %vm577_vm5, %v588_v47, %v589_v48  ;;  %v591_v16 = vrot.slane %v327_v50, 5  ;;  %v1512_v17 = vsel %vm630_vm6, %v631_v51, %v632_v52  ;;  %v634_v18 = vrot.slane %v1470_v49, 6 }
 0x101   : > { %439 = vrot.lane.b32.xlu0 %v421_v39, %s1320_s7  ;;  %v1517_v19 = vsel %vm577_vm5, %v579_v46, %v581_v12  ;;  %v1520_v20 = vsel %vm630_vm6, %v641_v53, %v642_v54  ;;  %v644_v23 = vrot.slane %v327_v50, 6  ;;  %v684_v24 = vrot.slane %v1417_v13, 7 }
 0x102   : > { %v1524_v25 = vsel %vm577_vm5, %v589_v48, %v591_v16  ;;  %v1527_v26 = vsel %vm630_vm6, %v632_v52, %v634_v18  ;;  %v685_v30 = vrot.slane %v1425_v21, 7  ;;  %v687_v31 = vrot.slane %v1470_v49, 7  ;;  %v1537_v36 = vpop.f32.mrb[8].mxu0  ;;  %v1539_v37 = vpop.f32.mrb[8].mxu1 }
 0x103   : > { %441 = vrot.lane.b32.xlu1 %v423_v6, %s1320_s7  ;;  %v1533_v32 = vsel %vm630_vm6, %v642_v54, %v644_v23  ;;  %v694_v33 = vrot.slane %v1419_v14, 7  ;;  %v695_v34 = vrot.slane %v1427_v22, 7  ;;  %v697_v35 = vrot.slane %v327_v50, 7  ;;  %2242 = vst [vmem:[#allocation13_spill] sm:$0xff] %v1537_v36  ;;  %2243 = vst [vmem:[#allocation14_spill] sm:$0xff] %v1539_v37  ;;  %v302_v47 = vpop.f32.mrb[9].mxu0 }
 0x104   : > { %v1542_v38 = vsel %vm683_vm7, %v684_v24, %v685_v30  ;;  %v1545_v39 = vsel %vm683_vm7, %v685_v30, %v687_v31  ;;  %v369_v45 = vrot.slane %v1470_v49, 1  ;;  %v757_v46 = vrot.slane %v1476_v55, 1  ;;  %v338_v48 = vpop.f32.mrb[9].mxu1  ;;  %v1559_v54 = vpop.f32.mrb[10].mxu0 }
 0x105   : > { %447 = vrot.lane.b32.xlu0 %v1451_v40, %s1320_s7  ;;  %v1552_v50 = vsel %vm683_vm7, %v694_v33, %v695_v34  ;;  %v1555_v51 = vsel %vm683_vm7, %v695_v34, %v697_v35  ;;  %v759_v52 = vrot.slane %v1490_v5, 1  ;;  %v756_v53 = vrot.slane %v1435_v28, 1  ;;  %2244 = vst [vmem:[#allocation15_spill] sm:$0xff] %v1559_v54  ;;  %v1561_v49 = vpop.f32.mrb[10].mxu1  ;;  %v1571_v60 = vpop.f32.mrb[11].mxu0 }
 0x106   : > { %2245 = vst [vmem:[#allocation16_spill] sm:$0xff] %v1561_v49  ;;  %v1566_v57 = vsel %vm365_vm1, %v367_v29, %v369_v45  ;;  %v767_v40 = vrot.slane %v1478_v56, 1  ;;  %v769_v58 = vrot.slane %v1487_v3, 1  ;;  %v766_v59 = vrot.slane %v1433_v27, 1  ;;  %v1573_v61 = vpop.f32.mrb[11].mxu1 }
 0x107   : > { %449 = vrot.lane.b32.xlu1 %v433_v7, %s1320_s7  ;;  %v1577_v62 = vsel %vm365_vm1, %v757_v46, %v759_v52  ;;  %v1580_v63 = vsel %vm365_vm1, %v756_v53, %v757_v46  ;;  %v809_v29 = vrot.slane %v1476_v55, 2  ;;  %v811_v0 = vrot.slane %v1490_v5, 2 }
 0x108   : > { %v1585_v1 = vsel %vm365_vm1, %v767_v40, %v769_v58  ;;  %v1588_v4 = vsel %vm365_vm1, %v766_v59, %v767_v40  ;;  %v808_v6 = vrot.slane %v1435_v28, 2  ;;  %v819_v7 = vrot.slane %v1478_v56, 2 }
 0x109   : > { %492 = vrot.lane.b32.xlu0 %v1455_v41, %s1321_s8  ;;  %v1595_v12 = vsel %vm418_vm2, %v809_v29, %v811_v0  ;;  %v821_v16 = vrot.slane %v1487_v3, 2  ;;  %v818_v18 = vrot.slane %v1433_v27, 2  ;;  %v861_v23 = vrot.slane %v1476_v55, 3 }
 0x10a   : > { %v1601_v24 = vsel %vm418_vm2, %v808_v6, %v809_v29  ;;  %v863_v30 = vrot.slane %v1490_v5, 3  ;;  %v860_v31 = vrot.slane %v1435_v28, 3  ;;  %v871_v33 = vrot.slane %v1478_v56, 3  ;;  %v1616_v46 = vpop.f32.mrb[12].mxu0  ;;  %v1618_v47 = vpop.f32.mrb[12].mxu1 }
 0x10b   : > { %494 = vrot.lane.b32.xlu1 %v1495_v8, %s1321_s8  ;;  %v1609_v41 = vsel %vm418_vm2, %v819_v7, %v821_v16  ;;  %v1612_v34 = vsel %vm418_vm2, %v818_v18, %v819_v7  ;;  %v873_v35 = vrot.slane %v1487_v3, 3  ;;  %v870_v45 = vrot.slane %v1433_v27, 3  ;;  %v1628_v40 = vpop.f32.mrb[13].mxu0  ;;  %v1630_v58 = vpop.f32.mrb[13].mxu1 }
 0x10c   : > { %v1621_v48 = vsel %vm471_vm3, %v861_v23, %v863_v30  ;;  %v1624_v52 = vsel %vm471_vm3, %v860_v31, %v861_v23  ;;  %v913_v8 = vrot.slane %v1476_v55, 4  ;;  %v915_v53 = vrot.slane %v1490_v5, 4  ;;  %2246 = vst [vmem:[#allocation17_spill] sm:$0xff] %v1628_v40  ;;  %v313_v7 = vpop.f32.mrb[14].mxu0  ;;  %v349_v16 = vpop.f32.mrb[14].mxu1 }
 0x10d   : > { %500 = vrot.lane.b32.xlu0 %v1458_v42, %s1321_s8  ;;  %v1635_v59 = vsel %vm471_vm3, %v871_v33, %v873_v35  ;;  %v1638_v29 = vsel %vm471_vm3, %v870_v45, %v871_v33  ;;  %v912_v0 = vrot.slane %v1435_v28, 4  ;;  %v923_v6 = vrot.slane %v1478_v56, 4  ;;  %v1648_v31 = vpop.f32.mrb[15].mxu0  ;;  %v1650_v35 = vpop.f32.mrb[15].mxu1 }
 0x10e   : > { %v1643_v18 = vsel %vm524_vm4, %v913_v8, %v915_v53  ;;  %v925_v23 = vrot.slane %v1487_v3, 4  ;;  %v922_v30 = vrot.slane %v1433_v27, 4  ;;  %v965_v42 = vrot.slane %v1476_v55, 5 }
 0x10f   : > { %502 = vrot.lane.b32.xlu1 %v1499_v9, %s1321_s8  ;;  %v1655_v33 = vsel %vm524_vm4, %v912_v0, %v913_v8  ;;  %v967_v45 = vrot.slane %v1490_v5, 5  ;;  %v964_v53 = vrot.slane %v1435_v28, 5  ;;  %v975_v7 = vrot.slane %v1478_v56, 5 }
 0x110   : > { %v1661_v16 = vsel %vm524_vm4, %v923_v6, %v925_v23  ;;  %v1664_v21 = vsel %vm524_vm4, %v922_v30, %v923_v6  ;;  %v977_v22 = vrot.slane %v1487_v3, 5  ;;  %v974_v13 = vrot.slane %v1433_v27, 5 }
 0x111   : > { %545 = vrot.lane.b32.xlu0 %v1461_v43, %s1322_s14  ;;  %v1671_v9 = vsel %vm577_vm5, %v965_v42, %v967_v45  ;;  %v1674_v8 = vsel %vm577_vm5, %v964_v53, %v965_v42  ;;  %v1017_v0 = vrot.slane %v1476_v55, 6  ;;  %v1019_v23 = vrot.slane %v1490_v5, 6 }
 0x112   : > { %v1679_v6 = vsel %vm577_vm5, %v975_v7, %v977_v22  ;;  %v1682_v30 = vsel %vm577_vm5, %v974_v13, %v975_v7  ;;  %v1016_v14 = vrot.slane %v1435_v28, 6  ;;  %v1027_v43 = vrot.slane %v1478_v56, 6 }
 0x113   : > { %547 = vrot.lane.b32.xlu1 %v1502_v10, %s1322_s14  ;;  %v1689_v42 = vsel %vm630_vm6, %v1017_v0, %v1019_v23  ;;  %v1029_v45 = vrot.slane %v1487_v3, 6  ;;  %v1026_v5 = vrot.slane %v1433_v27, 6  ;;  %v371_v22 = vrot.slane %v1537_v36, 1 }
 0x114   : > { %v1695_v53 = vsel %vm630_vm6, %v1016_v14, %v1017_v0  ;;  %v372_v13 = vrot.slane %v1559_v54, 1  ;;  %v381_v7 = vrot.slane %v1539_v37, 1  ;;  %v382_v55 = vrot.slane %v1561_v49, 1 }
 0x115   : > { %553 = vrot.lane.b32.xlu0 %v1464_v44, %s1322_s14  ;;  %v1703_v10 = vsel %vm630_vm6, %v1027_v43, %v1029_v45  ;;  %v1706_v3 = vsel %vm630_vm6, %v1026_v5, %v1027_v43  ;;  %v374_v23 = vrot.slane %v1616_v46, 1  ;;  %v424_v14 = vrot.slane %v1537_v36, 2 }
 0x116   : > { %v1711_v0 = vsel %vm365_vm1, %v371_v22, %v372_v13  ;;  %v1714_v56 = vsel %vm365_vm1, %v381_v7, %v382_v55  ;;  %v425_v27 = vrot.slane %v1559_v54, 2  ;;  %v384_v44 = vrot.slane %v1618_v47, 1 }
 0x117   : > { %2247 = vst [vmem:[#allocation18_spill] sm:$0xff] %v1711_v0  ;;  %2248 = vst [vmem:[#allocation19_spill] sm:$0xff] %v1714_v56  ;;  %555 = vrot.lane.b32.xlu1 %v1505_v11, %s1322_s14  ;;  %v1721_v43 = vsel %vm365_vm1, %v372_v13, %v374_v23  ;;  %v434_v45 = vrot.slane %v1539_v37, 2  ;;  %v435_v5 = vrot.slane %v1561_v49, 2  ;;  %v427_v22 = vrot.slane %v1616_v46, 2 }
 0x118   : > { %v1727_v28 = vsel %vm418_vm2, %v424_v14, %v425_v27  ;;  %v1730_v7 = vsel %vm365_vm1, %v382_v55, %v384_v44  ;;  %v477_v56 = vrot.slane %v1537_v36, 3  ;;  %v478_v0 = vrot.slane %v1559_v54, 3 }
 0x119   : > { %2249 = vst [vmem:[#allocation20_spill] sm:$0xff] %v1727_v28  ;;  %2250 = vst [vmem:[#allocation21_spill] sm:$0xff] %v1730_v7  ;;  %598 = vrot.lane.b32.xlu0 %v1485_v2, %s1323_s16  ;;  %v1737_v11 = vsel %vm418_vm2, %v434_v45, %v435_v5  ;;  %v1740_v13 = vsel %vm418_vm2, %v425_v27, %v427_v22  ;;  %v437_v23 = vrot.slane %v1618_v47, 2  ;;  %v487_v14 = vrot.slane %v1539_v37, 3 }
 0x11a   : > { %2251 = vst [vmem:[#allocation22_spill] sm:$0xff] %v1737_v11  ;;  %2252 = vst [vmem:[#allocation23_spill] sm:$0xff] %v1740_v13  ;;  %v1745_v55 = vsel %vm471_vm3, %v477_v56, %v478_v0  ;;  %v488_v44 = vrot.slane %v1561_v49, 3  ;;  %v480_v7 = vrot.slane %v1616_v46, 3  ;;  %v530_v28 = vrot.slane %v1537_v36, 4 }
 0x11b   : > { %2253 = vst [vmem:[#allocation24_spill] sm:$0xff] %v1745_v55  ;;  %600 = vrot.lane.b32.xlu1 %v1517_v19, %s1323_s16  ;;  %v1753_v2 = vsel %vm418_vm2, %v435_v5, %v437_v23  ;;  %v531_v27 = vrot.slane %v1559_v54, 4  ;;  %v490_v45 = vrot.slane %v1618_v47, 3  ;;  %v540_v22 = vrot.slane %v1539_v37, 4 }
 0x11c   : > { %v1759_v56 = vsel %vm471_vm3, %v487_v14, %v488_v44  ;;  %v1762_v55 = vsel %vm471_vm3, %v478_v0, %v480_v7  ;;  %v541_v13 = vrot.slane %v1561_v49, 4  ;;  %v533_v11 = vrot.slane %v1616_v46, 4 }
 0x11d   : > { %2254 = vst [vmem:[#allocation25_spill] sm:$0xff] %v1762_v55  ;;  %606 = vrot.lane.b32.xlu0 %v1509_v15, %s1323_s16  ;;  %v1769_v19 = vsel %vm524_vm4, %v530_v28, %v531_v27  ;;  %v1772_v5 = vsel %vm471_vm3, %v488_v44, %v490_v45  ;;  %v583_v23 = vrot.slane %v1537_v36, 5  ;;  %v584_v14 = vrot.slane %v1559_v54, 5 }
 0x11e   : > { %2255 = vst [vmem:[#allocation26_spill] sm:$0xff] %v1772_v5  ;;  %v1777_v0 = vsel %vm524_vm4, %v540_v22, %v541_v13  ;;  %v1780_v7 = vsel %vm524_vm4, %v531_v27, %v533_v11  ;;  %v543_v55 = vrot.slane %v1618_v47, 4  ;;  %v593_v15 = vrot.slane %v1539_v37, 5 }
 0x11f   : > { %2256 = vst [vmem:[#allocation27_spill] sm:$0xff] %v1777_v0  ;;  %2257 = vst [vmem:[#allocation28_spill] sm:$0xff] %v1780_v7  ;;  %608 = vrot.lane.b32.xlu1 %v1524_v25, %s1323_s16  ;;  %v1787_v28 = vsel %vm577_vm5, %v583_v23, %v584_v14  ;;  %v594_v44 = vrot.slane %v1561_v49, 5  ;;  %v586_v45 = vrot.slane %v1616_v46, 5  ;;  %v636_v22 = vrot.slane %v1537_v36, 6 }
 0x120   : > { %2258 = vst [vmem:[#allocation29_spill] sm:$0xff] %v1787_v28  ;;  %v1793_v0 = vsel %vm524_vm4, %v541_v13, %v543_v55  ;;  %v637_v11 = vrot.slane %v1559_v54, 6  ;;  %v596_v27 = vrot.slane %v1618_v47, 5  ;;  %v646_v7 = vrot.slane %v1539_v37, 6 }
 0x121   : > { %2259 = vst [vmem:[#allocation30_spill] sm:$0xff] %v1793_v0  ;;  %651 = vrot.lane.b32.xlu0 %v1512_v17, %s1324_s17  ;;  %v1801_v25 = vsel %vm577_vm5, %v593_v15, %v594_v44  ;;  %v1804_v23 = vsel %vm577_vm5, %v584_v14, %v586_v45  ;;  %v647_v28 = vrot.slane %v1561_v49, 6  ;;  %v639_v13 = vrot.slane %v1616_v46, 6 }
 0x122   : > { %v1809_v55 = vsel %vm630_vm6, %v636_v22, %v637_v11  ;;  %v1812_v0 = vsel %vm577_vm5, %v594_v44, %v596_v27  ;;  %v689_v5 = vrot.slane %v1537_v36, 7  ;;  %v690_v17 = vrot.slane %v1559_v54, 7 }
 0x123   : > { %653 = vrot.lane.b32.xlu1 %v1527_v26, %s1324_s17  ;;  %v1819_v14 = vsel %vm630_vm6, %v646_v7, %v647_v28  ;;  %v1822_v15 = vsel %vm630_vm6, %v637_v11, %v639_v13  ;;  %v649_v45 = vrot.slane %v1618_v47, 6  ;;  %v699_v22 = vrot.slane %v1539_v37, 7 }
 0x124   : > { %v1827_v44 = vsel %vm683_vm7, %v689_v5, %v690_v17  ;;  %v700_v27 = vrot.slane %v1561_v49, 7  ;;  %v692_v54 = vrot.slane %v1616_v46, 7  ;;  %v761_v36 = vrot.slane %v1571_v60, 1 }
 0x125   : > { %659 = vrot.lane.b32.xlu0 %v1520_v20, %s1324_s17  ;;  %v1835_v26 = vsel %vm630_vm6, %v647_v28, %v649_v45  ;;  %v762_v7 = vrot.slane %v1628_v40, 1  ;;  %v702_v11 = vrot.slane %v1618_v47, 7  ;;  %v771_v13 = vrot.slane %v1573_v61, 1 }
 0x126   : > { %v1841_v5 = vsel %vm683_vm7, %v699_v22, %v700_v27  ;;  %v1844_v49 = vsel %vm683_vm7, %v690_v17, %v692_v54  ;;  %v772_v46 = vrot.slane %v1630_v58, 1  ;;  %v764_v37 = vrot.slane %v1648_v31, 1 }
 0x127   : > { %661 = vrot.lane.b32.xlu1 %v1533_v32, %s1324_s17  ;;  %v1851_v20 = vsel %vm365_vm1, %v761_v36, %v762_v7  ;;  %v1854_v47 = vsel %vm683_vm7, %v700_v27, %v702_v11  ;;  %v813_v28 = vrot.slane %v1571_v60, 2  ;;  %v814_v45 = vrot.slane %v1628_v40, 2 }
 0x128   : > { %2260 = vst [vmem:[#allocation31_spill] sm:$0xff] %v1854_v47  ;;  %v1859_v54 = vsel %vm365_vm1, %v771_v13, %v772_v46  ;;  %v1862_v17 = vsel %vm365_vm1, %v762_v7, %v764_v37  ;;  %v774_v22 = vrot.slane %v1650_v35, 1  ;;  %v823_v32 = vrot.slane %v1573_v61, 2 }
 0x129   : > { %2261 = vst [vmem:[#allocation32_spill] sm:$0xff] %v1859_v54  ;;  %2262 = vst [vmem:[#allocation33_spill] sm:$0xff] %v1862_v17  ;;  %704 = vrot.lane.b32.xlu0 %v1542_v38, %s1325_s21  ;;  %v1869_v36 = vsel %vm418_vm2, %v813_v28, %v814_v45  ;;  %v824_v27 = vrot.slane %v1630_v58, 2  ;;  %v816_v11 = vrot.slane %v1648_v31, 2  ;;  %v865_v13 = vrot.slane %v1571_v60, 3 }
 0x12a   : > { %2263 = vst [vmem:[#allocation34_spill] sm:$0xff] %v1869_v36  ;;  %v1875_v37 = vsel %vm365_vm1, %v772_v46, %v774_v22  ;;  %v866_v7 = vrot.slane %v1628_v40, 3  ;;  %v826_v17 = vrot.slane %v1650_v35, 2  ;;  %v875_v54 = vrot.slane %v1573_v61, 3 }
 0x12b   : > { %2264 = vst [vmem:[#allocation35_spill] sm:$0xff] %v1875_v37  ;;  %706 = vrot.lane.b32.xlu1 %v1545_v39, %s1325_s21  ;;  %v1883_v38 = vsel %vm418_vm2, %v823_v32, %v824_v27  ;;  %v1886_v28 = vsel %vm418_vm2, %v814_v45, %v816_v11  ;;  %v876_v36 = vrot.slane %v1630_v58, 3  ;;  %v868_v46 = vrot.slane %v1648_v31, 3 }
 0x12c   : > { %v1891_v22 = vsel %vm471_vm3, %v865_v13, %v866_v7  ;;  %v1894_v37 = vsel %vm418_vm2, %v824_v27, %v826_v17  ;;  %v917_v47 = vrot.slane %v1571_v60, 4  ;;  %v918_v39 = vrot.slane %v1628_v40, 4 }
 0x12d   : > { %2265 = vst [vmem:[#allocation36_spill] sm:$0xff] %v1891_v22  ;;  %2266 = vst [vmem:[#allocation37_spill] sm:$0xff] %v1894_v37  ;;  %712 = vrot.lane.b32.xlu0 %v1552_v50, %s1325_s21  ;;  %v1901_v45 = vsel %vm471_vm3, %v875_v54, %v876_v36  ;;  %v1904_v32 = vsel %vm471_vm3, %v866_v7, %v868_v46  ;;  %v878_v11 = vrot.slane %v1650_v35, 3  ;;  %v927_v13 = vrot.slane %v1573_v61, 4 }
 0x12e   : > { %2267 = vst [vmem:[#allocation38_spill] sm:$0xff] %v1901_v45  ;;  %2268 = vst [vmem:[#allocation39_spill] sm:$0xff] %v1904_v32  ;;  %v1909_v17 = vsel %vm524_vm4, %v917_v47, %v918_v39  ;;  %v928_v27 = vrot.slane %v1630_v58, 4  ;;  %v920_v37 = vrot.slane %v1648_v31, 4  ;;  %v969_v22 = vrot.slane %v1571_v60, 5 }
 0x12f   : > { %2269 = vst [vmem:[#allocation40_spill] sm:$0xff] %v1909_v17  ;;  %714 = vrot.lane.b32.xlu1 %v1555_v51, %s1325_s21  ;;  %v1917_v50 = vsel %vm471_vm3, %v876_v36, %v878_v11  ;;  %v970_v54 = vrot.slane %v1628_v40, 5  ;;  %v930_v7 = vrot.slane %v1650_v35, 4  ;;  %v979_v46 = vrot.slane %v1573_v61, 5 }
 0x130   : > { %v1923_v47 = vsel %vm524_vm4, %v927_v13, %v928_v27  ;;  %v1926_v17 = vsel %vm524_vm4, %v918_v39, %v920_v37  ;;  %v980_v32 = vrot.slane %v1630_v58, 5  ;;  %v972_v45 = vrot.slane %v1648_v31, 5 }
 0x131   : > { %2270 = vst [vmem:[#allocation41_spill] sm:$0xff] %v1926_v17  ;;  %388 = vrot.lane.b32.xlu0 %v1566_v57, %s1319_s6  ;;  %v1933_v51 = vsel %vm577_vm5, %v969_v22, %v970_v54  ;;  %v1936_v36 = vsel %vm524_vm4, %v928_v27, %v930_v7  ;;  %v1021_v11 = vrot.slane %v1571_v60, 6  ;;  %v1022_v13 = vrot.slane %v1628_v40, 6 }
 0x132   : > { %v1941_v37 = vsel %vm577_vm5, %v979_v46, %v980_v32  ;;  %v1944_v39 = vsel %vm577_vm5, %v970_v54, %v972_v45  ;;  %v982_v17 = vrot.slane %v1650_v35, 5  ;;  %v1031_v57 = vrot.slane %v1573_v61, 6 }
 0x133   : > { %778 = vrot.lane.b32.xlu1 %v1577_v62, %s1319_s6  ;;  %v1951_v22 = vsel %vm630_vm6, %v1021_v11, %v1022_v13  ;;  %v1032_v27 = vrot.slane %v1630_v58, 6  ;;  %v1024_v7 = vrot.slane %v1648_v31, 6  ;;  %v1034_v46 = vrot.slane %v1650_v35, 6 }
 0x134   : > { %v1957_v40 = vsel %vm577_vm5, %v980_v32, %v982_v17 }
 0x135   : > { %776 = vrot.lane.b32.xlu0 %v1580_v63, %s1319_s6  ;;  %v1962_v45 = vsel %vm630_vm6, %v1031_v57, %v1032_v27  ;;  %v1965_v62 = vsel %vm630_vm6, %v1022_v13, %v1024_v7  ;;  %v1968_v54 = vsel %vm630_vm6, %v1032_v27, %v1034_v46  ;;  %v2272_v63 = vld [vmem:[#allocation19_spill] sm:$0xff] }
 0x137   : > { %786 = vrot.lane.b32.xlu1 %v1585_v1, %s1319_s6  ;;  %v2273_v1 = vld [vmem:[#allocation20_spill] sm:$0xff] }
 0x139   : > { %784 = vrot.lane.b32.xlu0 %v1588_v4, %s1319_s6 }
 0x13b   : > { %830 = vrot.lane.b32.xlu1 %v1595_v12, %s1320_s7  ;;  %v2274_v12 = vld [vmem:[#allocation21_spill] sm:$0xff] }
 0x13d   : > { %828 = vrot.lane.b32.xlu0 %v1601_v24, %s1320_s7  ;;  %v2275_v24 = vld [vmem:[#allocation22_spill] sm:$0xff] }
 0x13f   : > { %838 = vrot.lane.b32.xlu1 %v1609_v41, %s1320_s7 }
 0x141   : > { %836 = vrot.lane.b32.xlu0 %v1612_v34, %s1320_s7  ;;  %v2276_v34 = vld [vmem:[#allocation23_spill] sm:$0xff] }
 0x143   : > { %882 = vrot.lane.b32.xlu1 %v1621_v48, %s1321_s8 }
 0x145   : > { %880 = vrot.lane.b32.xlu0 %v1624_v52, %s1321_s8  ;;  %v2277_v52 = vld [vmem:[#allocation24_spill] sm:$0xff] }
 0x147   : > { %890 = vrot.lane.b32.xlu1 %v1635_v59, %s1321_s8 }
 0x149   : > { %888 = vrot.lane.b32.xlu0 %v1638_v29, %s1321_s8 }
 0x14b   : > { %934 = vrot.lane.b32.xlu1 %v1643_v18, %s1322_s14  ;;  %v2278_v18 = vld [vmem:[#allocation6_spill] sm:$0xff] }
 0x14d   : > { %932 = vrot.lane.b32.xlu0 %v1655_v33, %s1322_s14  ;;  %v2279_v33 = vld [vmem:[#allocation25_spill] sm:$0xff] }
 0x14f   : > { %942 = vrot.lane.b32.xlu1 %v1661_v16, %s1322_s14 }
 0x151   : > { %940 = vrot.lane.b32.xlu0 %v1664_v21, %s1322_s14  ;;  %v2271_v21 = vld [vmem:[#allocation18_spill] sm:$0xff] }
 0x153   : > { %986 = vrot.lane.b32.xlu1 %v1671_v9, %s1323_s16 }
 0x155   : > { %984 = vrot.lane.b32.xlu0 %v1674_v8, %s1323_s16 }
 0x157   : > { %994 = vrot.lane.b32.xlu1 %v1679_v6, %s1323_s16  ;;  %v2280_v6 = vld [vmem:[#allocation26_spill] sm:$0xff] }
 0x159   : > { %992 = vrot.lane.b32.xlu0 %v1682_v30, %s1323_s16 }
 0x15b   : > { %1038 = vrot.lane.b32.xlu1 %v1689_v42, %s1324_s17  ;;  %v2281_v42 = vld [vmem:[#allocation27_spill] sm:$0xff] }
 0x15d   : > { %1036 = vrot.lane.b32.xlu0 %v1695_v53, %s1324_s17 }
 0x15f   : > { %1046 = vrot.lane.b32.xlu1 %v1703_v10, %s1324_s17  ;;  %v2282_v10 = vld [vmem:[#allocation28_spill] sm:$0xff] }
 0x161   : > { %1044 = vrot.lane.b32.xlu0 %v1706_v3, %s1324_s17 }
 0x163   : > { %390 = vrot.lane.b32.xlu1 %v2271_v21, %s1319_s6 }
 0x165   : > { %398 = vrot.lane.b32.xlu0 %v2272_v63, %s1319_s6 }
 0x167   : > { %392 = vrot.lane.b32.xlu1 %v1721_v43, %s1319_s6  ;;  %v2283_v43 = vld [vmem:[#allocation29_spill] sm:$0xff] }
 0x169   : > { %443 = vrot.lane.b32.xlu0 %v2273_v1, %s1320_s7 }
 0x16b   : > { %v387_v4 = vpop.permute.xlu0 %386  ;;  %400 = vrot.lane.b32.xlu1 %v2274_v12, %s1319_s6 }
 0x16d   : > { %451 = vrot.lane.b32.xlu0 %v2275_v24, %s1320_s7 }
 0x16f   : > { %v395_v41 = vpop.permute.xlu0 %394  ;;  %445 = vrot.lane.b32.xlu1 %v2276_v34, %s1320_s7 }
 0x170   : > { %v414_v31 = vadd.f32 %v395_v41, %v2278_v18 }
 0x171   : > { %v397_v48 = vpop.permute.xlu1 %396  ;;  %496 = vrot.lane.b32.xlu0 %v2277_v52, %s1321_s8 }
 0x173   : > { %v440_v59 = vpop.permute.xlu0 %439  ;;  %453 = vrot.lane.b32.xlu1 %v1753_v2, %s1320_s7 }
 0x175   : > { %v2032_v29 = vpop.permute.xlu1 %441  ;;  %504 = vrot.lane.b32.xlu0 %v1759_v56, %s1321_s8  ;;  %v2284_v56 = vld [vmem:[#allocation30_spill] sm:$0xff] }
 0x177   : > { %v448_v35 = vpop.permute.xlu0 %447  ;;  %498 = vrot.lane.b32.xlu1 %v2279_v33, %s1321_s8  ;;  %v2289_v33 = vld [vmem:[#allocation10_spill] sm:$0xff] }
 0x178   : > { %v467_v16 = vadd.f32 %v448_v35, %v414_v31 }
 0x179   : > { %v450_v9 = vpop.permute.xlu1 %449  ;;  %549 = vrot.lane.b32.xlu0 %v1769_v19, %s1322_s14 }
 0x17b   : > { %v493_v8 = vpop.permute.xlu0 %492  ;;  %506 = vrot.lane.b32.xlu1 %v2280_v6, %s1321_s8 }
 0x17d   : > { %v2043_v30 = vpop.permute.xlu1 %494  ;;  %557 = vrot.lane.b32.xlu0 %v2281_v42, %s1322_s14 }
 0x17f   : > { %v501_v53 = vpop.permute.xlu0 %500  ;;  %551 = vrot.lane.b32.xlu1 %v2282_v10, %s1322_s14 }
 0x181   : > { %v503_v3 = vpop.permute.xlu1 %502  ;;  %602 = vrot.lane.b32.xlu0 %v2283_v43, %s1323_s16 }
 0x183   : > { %v546_v2 = vpop.permute.xlu0 %545  ;;  %559 = vrot.lane.b32.xlu1 %v2284_v56, %s1322_s14  ;;  %v2293_v56 = vld [vmem:[#allocation35_spill] sm:$0xff] }
 0x185   : > { %v2053_v19 = vpop.permute.xlu1 %547  ;;  %610 = vrot.lane.b32.xlu0 %v1801_v25, %s1323_s16  ;;  %v2285_v25 = vld [vmem:[#allocation5_spill] sm:$0xff] }
 0x186   : > { %v410_v27 = vadd.f32 %v387_v4, %v2285_v25  ;;  %v520_v4 = vadd.f32 %v501_v53, %v467_v16  ;;  %v2291_v53 = vld [vmem:[#allocation34_spill] sm:$0xff] }
 0x187   : > { %v554_v32 = vpop.permute.xlu0 %553  ;;  %604 = vrot.lane.b32.xlu1 %v1804_v23, %s1323_s16 }
 0x188   : > { %v463_v23 = vadd.f32 %v440_v59, %v410_v27  ;;  %v573_v24 = vadd.f32 %v554_v32, %v520_v4  ;;  %v2294_v32 = vld [vmem:[#allocation7_spill] sm:$0xff] }
 0x189   : > { %v556_v17 = vpop.permute.xlu1 %555  ;;  %655 = vrot.lane.b32.xlu0 %v1809_v55, %s1324_s17 }
 0x18b   : > { %v599_v11 = vpop.permute.xlu0 %598  ;;  %612 = vrot.lane.b32.xlu1 %v1812_v0, %s1323_s16  ;;  %v516_v0 = vadd.f32 %v493_v8, %v463_v23 }
 0x18d   : > { %v601_v13 = vpop.permute.xlu1 %600  ;;  %663 = vrot.lane.b32.xlu0 %v1819_v14, %s1324_s17  ;;  %v2286_v14 = vld [vmem:[#allocation8_spill] sm:$0xff]  ;;  %v569_v63 = vadd.f32 %v546_v2, %v516_v0 }
 0x18e   : > { %v415_v21 = vadd.f32 %v397_v48, %v2286_v14  ;;  %v2296_v0 = vld [vmem:[#allocation36_spill] sm:$0xff] }
 0x18f   : > { %v607_v57 = vpop.permute.xlu0 %606  ;;  %657 = vrot.lane.b32.xlu1 %v1822_v15, %s1324_s17 }
 0x190   : > { %v468_v1 = vadd.f32 %v450_v9, %v415_v21  ;;  %v626_v52 = vadd.f32 %v607_v57, %v573_v24 }
 0x191   : > { %v609_v7 = vpop.permute.xlu1 %608  ;;  %708 = vrot.lane.b32.xlu0 %v1827_v44, %s1325_s21  ;;  %v622_v44 = vadd.f32 %v599_v11, %v569_v63  ;;  %v2295_v11 = vld [vmem:[#allocation12_spill] sm:$0xff]  ;;  %v2297_v63 = vld [vmem:[#allocation37_spill] sm:$0xff] }
 0x193   : > { %v652_v55 = vpop.permute.xlu0 %651  ;;  %665 = vrot.lane.b32.xlu1 %v1835_v26, %s1324_s17  ;;  %v521_v26 = vadd.f32 %v503_v3, %v468_v1  ;;  %v2292_v3 = vld [vmem:[#allocation9_spill] sm:$0xff] }
 0x194   : > { %v675_v41 = vadd.f32 %v652_v55, %v622_v44 }
 0x195   : > { %v654_v46 = vpop.permute.xlu1 %653  ;;  %716 = vrot.lane.b32.xlu0 %v1841_v5, %s1325_s21  ;;  %v2287_v5 = vld [vmem:[#allocation31_spill] sm:$0xff]  ;;  %v574_v48 = vadd.f32 %v556_v17, %v521_v26 }
 0x197   : > { %v660_v15 = vpop.permute.xlu0 %659  ;;  %710 = vrot.lane.b32.xlu1 %v1844_v49, %s1325_s21  ;;  %v2288_v49 = vld [vmem:[#allocation32_spill] sm:$0xff]  ;;  %v627_v31 = vadd.f32 %v609_v7, %v574_v48 }
 0x198   : > { %v679_v35 = vadd.f32 %v660_v15, %v626_v52 }
 0x199   : > { %v662_v12 = vpop.permute.xlu1 %661  ;;  %780 = vrot.lane.b32.xlu0 %v1851_v20, %s1319_s6  ;;  %v2290_v20 = vld [vmem:[#allocation33_spill] sm:$0xff] }
 0x19a   : > { %v680_v8 = vadd.f32 %v662_v12, %v627_v31  ;;  %v2300_v12 = vld [vmem:[#allocation40_spill] sm:$0xff] }
 0x19b   : > { %v705_v34 = vpop.permute.xlu0 %704  ;;  %718 = vrot.lane.b32.xlu1 %v2287_v5, %s1325_s21 }
 0x19c   : > { %v728_v59 = vadd.f32 %v705_v34, %v675_v41  ;;  %v2302_v41 = vld [vmem:[#allocation41_spill] sm:$0xff] }
 0x19d   : > { %v707_v18 = vpop.permute.xlu1 %706  ;;  %788 = vrot.lane.b32.xlu0 %v2288_v49, %s1319_s6 }
 0x19e   : > { %v736_v16 = vadd.f32 %v728_v59, %v2289_v33 }
 0x19f   : > { %v713_v9 = vpop.permute.xlu0 %712  ;;  %782 = vrot.lane.b32.xlu1 %v2290_v20, %s1319_s6 }
 0x1a0   : > { %v732_v6 = vadd.f32 %v713_v9, %v679_v35 }
 0x1a1   : > { %v715_v42 = vpop.permute.xlu1 %714  ;;  %832 = vrot.lane.b32.xlu0 %v2291_v53, %s1320_s7 }
 0x1a2   : > { %v733_v10 = vadd.f32 %v715_v42, %v680_v8  ;;  %v740_v43 = vadd.f32 %v732_v6, %v2292_v3 }
 0x1a3   : > { %v389_v2 = vpop.permute.xlu0 %388  ;;  %790 = vrot.lane.b32.xlu1 %v2293_v56, %s1319_s6 }
 0x1a4   : > { %v411_v17 = vadd.f32 %v389_v2, %v2294_v32  ;;  %v741_v57 = vadd.f32 %v733_v10, %v2295_v11 }
 0x1a5   : > { %v779_v25 = vpop.permute.xlu1 %778  ;;  %840 = vrot.lane.b32.xlu0 %v1883_v38, %s1320_s7 }
 0x1a6   : > { %v464_v27 = vadd.f32 %v2032_v29, %v411_v17  ;;  %v2298_v29 = vld [vmem:[#allocation38_spill] sm:$0xff] }
 0x1a7   : > { %v777_v7 = vpop.permute.xlu0 %776  ;;  %834 = vrot.lane.b32.xlu1 %v1886_v28, %s1320_s7  ;;  %v2299_v28 = vld [vmem:[#allocation39_spill] sm:$0xff] }
 0x1a8   : > { %v517_v23 = vadd.f32 %v2043_v30, %v464_v27 }
 0x1a9   : > { %v787_v55 = vpop.permute.xlu1 %786  ;;  %884 = vrot.lane.b32.xlu0 %v2296_v0, %s1321_s8  ;;  %v2304_v0 = vld [vmem:[#allocation14_spill] sm:$0xff] }
 0x1aa   : > { %v570_v14 = vadd.f32 %v2053_v19, %v517_v23  ;;  %v2301_v19 = vld [vmem:[#allocation11_spill] sm:$0xff] }
 0x1ab   : > { %v785_v21 = vpop.permute.xlu0 %784  ;;  %842 = vrot.lane.b32.xlu1 %v2297_v63, %s1320_s7  ;;  %v2305_v63 = vld [vmem:[#allocation15_spill] sm:$0xff] }
 0x1ac   : > { %v623_v15 = vadd.f32 %v601_v13, %v570_v14  ;;  %v804_v35 = vadd.f32 %v785_v21, %v740_v43 }
 0x1ad   : > { %v831_v38 = vpop.permute.xlu1 %830  ;;  %892 = vrot.lane.b32.xlu0 %v2298_v29, %s1321_s8 }
 0x1ae   : > { %v676_v1 = vadd.f32 %v654_v46, %v623_v15 }
 0x1af   : > { %v829_v4 = vpop.permute.xlu0 %828  ;;  %886 = vrot.lane.b32.xlu1 %v2299_v28, %s1321_s8 }
 0x1b0   : > { %v729_v30 = vadd.f32 %v707_v18, %v676_v1 }
 0x1b1   : > { %v839_v44 = vpop.permute.xlu1 %838  ;;  %936 = vrot.lane.b32.xlu0 %v2300_v12, %s1322_s14 }
 0x1b2   : > { %v737_v26 = vadd.f32 %v729_v30, %v2301_v19 }
 0x1b3   : > { %v837_v24 = vpop.permute.xlu0 %836  ;;  %894 = vrot.lane.b32.xlu1 %v1917_v50, %s1321_s8 }
 0x1b5   : > { %v883_v13 = vpop.permute.xlu1 %882  ;;  %944 = vrot.lane.b32.xlu0 %v1923_v47, %s1322_s14  ;;  %v801_v47 = vadd.f32 %v779_v25, %v737_v26 }
 0x1b7   : > { %v881_v46 = vpop.permute.xlu0 %880  ;;  %938 = vrot.lane.b32.xlu1 %v2302_v41, %s1322_s14 }
 0x1b9   : > { %v891_v34 = vpop.permute.xlu1 %890  ;;  %988 = vrot.lane.b32.xlu0 %v1933_v51, %s1323_s16  ;;  %v853_v51 = vadd.f32 %v831_v38, %v801_v47 }
 0x1bb   : > { %v889_v5 = vpop.permute.xlu0 %888  ;;  %946 = vrot.lane.b32.xlu1 %v1936_v36, %s1322_s14  ;;  %v905_v31 = vadd.f32 %v883_v13, %v853_v51 }
 0x1bd   : > { %v935_v48 = vpop.permute.xlu1 %934  ;;  %996 = vrot.lane.b32.xlu0 %v1941_v37, %s1323_s16  ;;  %v800_v37 = vadd.f32 %v777_v7, %v736_v16  ;;  %v2303_v7 = vld [vmem:[#allocation13_spill] sm:$0xff] }
 0x1bf   : > { %v933_v50 = vpop.permute.xlu0 %932  ;;  %990 = vrot.lane.b32.xlu1 %v1944_v39, %s1323_s16  ;;  %v805_v39 = vadd.f32 %v787_v55, %v741_v57  ;;  %v852_v49 = vadd.f32 %v829_v4, %v800_v37  ;;  %v2306_v4 = vld [vmem:[#allocation16_spill] sm:$0xff] }
 0x1c1   : > { %v943_v52 = vpop.permute.xlu1 %942  ;;  %1040 = vrot.lane.b32.xlu0 %v1951_v22, %s1324_s17  ;;  %v857_v33 = vadd.f32 %v839_v44, %v805_v39  ;;  %v904_v9 = vadd.f32 %v881_v46, %v852_v49 }
 0x1c3   : > { %v941_v59 = vpop.permute.xlu0 %940  ;;  %998 = vrot.lane.b32.xlu1 %v1957_v40, %s1323_s16  ;;  %v957_v40 = vadd.f32 %v935_v48, %v905_v31  ;;  %v909_v16 = vadd.f32 %v891_v34, %v857_v33  ;;  %v956_v8 = vadd.f32 %v933_v50, %v904_v9 }
 0x1c5   : > { %v987_v36 = vpop.permute.xlu1 %986  ;;  %1048 = vrot.lane.b32.xlu0 %v1962_v45, %s1324_s17  ;;  %v856_v45 = vadd.f32 %v837_v24, %v804_v35  ;;  %v961_v53 = vadd.f32 %v943_v52, %v909_v16 }
 0x1c6   : > { %v1009_v6 = vadd.f32 %v987_v36, %v957_v40 }
 0x1c7   : > { %v985_v18 = vpop.permute.xlu0 %984  ;;  %1042 = vrot.lane.b32.xlu1 %v1965_v62, %s1324_s17  ;;  %v908_v42 = vadd.f32 %v889_v5, %v856_v45 }
 0x1c8   : > { %v1008_v10 = vadd.f32 %v985_v18, %v956_v8 }
 0x1c9   : > { %v995_v22 = vpop.permute.xlu1 %994  ;;  %v960_v2 = vadd.f32 %v941_v59, %v908_v42 }
 0x1ca   : > { %v1013_v56 = vadd.f32 %v995_v22, %v961_v53 }
 0x1cb   : > { %v993_v20 = vpop.permute.xlu0 %992  ;;  %1050 = vrot.lane.b32.xlu1 %v1968_v54, %s1324_s17 }
 0x1cc   : > { %v1012_v17 = vadd.f32 %v993_v20, %v960_v2 }
 0x1cd   : > { %v1039_v62 = vpop.permute.xlu1 %1038 }
 0x1ce   : > { %v1061_v3 = vadd.f32 %v1039_v62, %v1009_v6 }
 0x1cf   : > { %v1037_v43 = vpop.permute.xlu0 %1036 }
 0x1d0   : > { %1070 = vst.msk [vmem:[%s2138_s24 + $0x8] sm:$0xff] %vm1068_vm8, %v1061_v3  ;;  %v1060_v54 = vadd.f32 %v1037_v43, %v1008_v10 }
 0x1d1   : > { %v1047_v32 = vpop.permute.xlu1 %1046 }
 0x1d2   : > { %1069 = vst.msk [vmem:[%s2138_s24] sm:$0xff] %vm1068_vm8, %v1060_v54  ;;  %v1065_v11 = vadd.f32 %v1047_v32, %v1013_v56 }
 0x1d3   : > { %v1045_v57 = vpop.permute.xlu0 %1044 }
 0x1d4   : > { %1074 = vst.msk [vmem:[%s2138_s24 + $0x28] sm:$0xff] %vm1068_vm8, %v1065_v11  ;;  %v1064_v25 = vadd.f32 %v1045_v57, %v1012_v17 }
 0x1d5   : > { %v391_v27 = vpop.permute.xlu1 %390 }
 0x1d6   : > { %1073 = vst.msk [vmem:[%s2138_s24 + $0x20] sm:$0xff] %vm1068_vm8, %v1064_v25  ;;  %v412_v23 = vadd.f32 %v391_v27, %v2303_v7  ;;  %v2307_v27 = vld [vmem:[#allocation17_spill] sm:$0xff] }
 0x1d7   : > { %v399_v55 = vpop.permute.xlu0 %398 }
 0x1d8   : > { %v416_v14 = vadd.f32 %v399_v55, %v2304_v0 }
 0x1d9   : > { %v393_v21 = vpop.permute.xlu1 %392 }
 0x1da   : > { %v413_v15 = vadd.f32 %v393_v21, %v2305_v63 }
 0x1db   : > { %v444_v38 = vpop.permute.xlu0 %443 }
 0x1dc   : > { %v465_v29 = vadd.f32 %v444_v38, %v412_v23 }
 0x1dd   : > { %v401_v1 = vpop.permute.xlu1 %400 }
 0x1de   : > { %v417_v28 = vadd.f32 %v401_v1, %v2306_v4 }
 0x1df   : > { %v452_v30 = vpop.permute.xlu0 %451 }
 0x1e0   : > { %v469_v44 = vadd.f32 %v452_v30, %v416_v14 }
 0x1e1   : > { %v446_v12 = vpop.permute.xlu1 %445 }
 0x1e2   : > { %v466_v19 = vadd.f32 %v446_v12, %v413_v15 }
 0x1e3   : > { %v497_v26 = vpop.permute.xlu0 %496 }
 0x1e4   : > { %v518_v37 = vadd.f32 %v497_v26, %v465_v29 }
 0x1e5   : > { %v454_v24 = vpop.permute.xlu1 %453 }
 0x1e6   : > { %v470_v13 = vadd.f32 %v454_v24, %v417_v28 }
 0x1e7   : > { %v505_v46 = vpop.permute.xlu0 %504 }
 0x1e8   : > { %v522_v31 = vadd.f32 %v505_v46, %v469_v44 }
 0x1e9   : > { %v499_v41 = vpop.permute.xlu1 %498 }
 0x1ea   : > { %v519_v33 = vadd.f32 %v499_v41, %v466_v19 }
 0x1eb   : > { %v550_v34 = vpop.permute.xlu0 %549 }
 0x1ec   : > { %v571_v39 = vadd.f32 %v550_v34, %v518_v37 }
 0x1ed   : > { %v507_v5 = vpop.permute.xlu1 %506 }
 0x1ee   : > { %v523_v62 = vadd.f32 %v507_v5, %v470_v13 }
 0x1ef   : > { %v558_v48 = vpop.permute.xlu0 %557 }
 0x1f0   : > { %v575_v9 = vadd.f32 %v558_v48, %v522_v31 }
 0x1f1   : > { %v552_v50 = vpop.permute.xlu1 %551 }
 0x1f2   : > { %v572_v45 = vadd.f32 %v552_v50, %v519_v33 }
 0x1f3   : > { %v603_v47 = vpop.permute.xlu0 %602 }
 0x1f4   : > { %v624_v22 = vadd.f32 %v603_v47, %v571_v39 }
 0x1f5   : > { %v560_v52 = vpop.permute.xlu1 %559 }
 0x1f6   : > { %v576_v43 = vadd.f32 %v560_v52, %v523_v62 }
 0x1f7   : > { %v611_v59 = vpop.permute.xlu0 %610 }
 0x1f8   : > { %v628_v16 = vadd.f32 %v611_v59, %v575_v9 }
 0x1f9   : > { %v605_v51 = vpop.permute.xlu1 %604 }
 0x1fa   : > { %v625_v42 = vadd.f32 %v605_v51, %v572_v45 }
 0x1fb   : > { %v656_v36 = vpop.permute.xlu0 %655 }
 0x1fc   : > { %v677_v40 = vadd.f32 %v656_v36, %v624_v22 }
 0x1fd   : > { %v613_v18 = vpop.permute.xlu1 %612 }
 0x1fe   : > { %v629_v32 = vadd.f32 %v613_v18, %v576_v43 }
 0x1ff   : > { %v664_v49 = vpop.permute.xlu0 %663 }
 0x200   : > { %v681_v53 = vadd.f32 %v664_v49, %v628_v16 }
 0x201   : > { %v658_v35 = vpop.permute.xlu1 %657 }
 0x202   : > { %v678_v2 = vadd.f32 %v658_v35, %v625_v42 }
 0x203   : > { %v709_v20 = vpop.permute.xlu0 %708 }
 0x204   : > { %v730_v8 = vadd.f32 %v709_v20, %v677_v40 }
 0x205   : > { %v666_v6 = vpop.permute.xlu1 %665 }
 0x206   : > { %v738_v10 = vadd.f32 %v730_v8, %v1571_v60  ;;  %v682_v25 = vadd.f32 %v666_v6, %v629_v32 }
 0x207   : > { %v717_v3 = vpop.permute.xlu0 %716 }
 0x208   : > { %v734_v56 = vadd.f32 %v717_v3, %v681_v53 }
 0x209   : > { %v711_v54 = vpop.permute.xlu1 %710 }
 0x20a   : > { %v731_v17 = vadd.f32 %v711_v54, %v678_v2  ;;  %v742_v11 = vadd.f32 %v734_v56, %v1573_v61 }
 0x20b   : > { %v781_v57 = vpop.permute.xlu0 %780 }
 0x20c   : > { %v739_v7 = vadd.f32 %v731_v17, %v2307_v27  ;;  %v802_v19 = vadd.f32 %v781_v57, %v738_v10 }
 0x20d   : > { %v719_v23 = vpop.permute.xlu1 %718 }
 0x20e   : > { %v735_v55 = vadd.f32 %v719_v23, %v682_v25 }
 0x20f   : > { %v789_v0 = vpop.permute.xlu0 %788 }
 0x210   : > { %v743_v14 = vadd.f32 %v735_v55, %v1630_v58  ;;  %v806_v46 = vadd.f32 %v789_v0, %v742_v11 }
 0x211   : > { %v783_v21 = vpop.permute.xlu1 %782 }
 0x212   : > { %v803_v34 = vadd.f32 %v783_v21, %v739_v7 }
 0x213   : > { %v833_v60 = vpop.permute.xlu0 %832 }
 0x214   : > { %v854_v24 = vadd.f32 %v833_v60, %v802_v19 }
 0x215   : > { %v791_v63 = vpop.permute.xlu1 %790 }
 0x216   : > { %v807_v36 = vadd.f32 %v791_v63, %v743_v14 }
 0x217   : > { %v841_v15 = vpop.permute.xlu0 %840 }
 0x218   : > { %v858_v5 = vadd.f32 %v841_v15, %v806_v46 }
 0x219   : > { %v835_v38 = vpop.permute.xlu1 %834 }
 0x21a   : > { %v855_v47 = vadd.f32 %v835_v38, %v803_v34 }
 0x21b   : > { %v885_v29 = vpop.permute.xlu0 %884 }
 0x21c   : > { %v906_v41 = vadd.f32 %v885_v29, %v854_v24 }
 0x21d   : > { %v843_v1 = vpop.permute.xlu1 %842 }
 0x21e   : > { %v859_v31 = vadd.f32 %v843_v1, %v807_v36 }
 0x21f   : > { %v893_v4 = vpop.permute.xlu0 %892 }
 0x220   : > { %v910_v52 = vadd.f32 %v893_v4, %v858_v5 }
 0x221   : > { %v887_v28 = vpop.permute.xlu1 %886 }
 0x222   : > { %v907_v37 = vadd.f32 %v887_v28, %v855_v47 }
 0x223   : > { %v937_v30 = vpop.permute.xlu0 %936 }
 0x224   : > { %v958_v48 = vadd.f32 %v937_v30, %v906_v41 }
 0x225   : > { %v895_v61 = vpop.permute.xlu1 %894 }
 0x226   : > { %v911_v9 = vadd.f32 %v895_v61, %v859_v31 }
 0x227   : > { %v945_v44 = vpop.permute.xlu0 %944 }
 0x228   : > { %v962_v18 = vadd.f32 %v945_v44, %v910_v52 }
 0x229   : > { %v939_v12 = vpop.permute.xlu1 %938 }
 0x22a   : > { %v959_v22 = vadd.f32 %v939_v12, %v907_v37 }
 0x22b   : > { %v989_v26 = vpop.permute.xlu0 %988 }
 0x22c   : > { %v1010_v59 = vadd.f32 %v989_v26, %v958_v48 }
 0x22d   : > { %v947_v13 = vpop.permute.xlu1 %946 }
 0x22e   : > { %v963_v16 = vadd.f32 %v947_v13, %v911_v9 }
 0x22f   : > { %v997_v58 = vpop.permute.xlu0 %996 }
 0x230   : > { %v1014_v35 = vadd.f32 %v997_v58, %v962_v18 }
 0x231   : > { %v991_v50 = vpop.permute.xlu1 %990 }
 0x232   : > { %v1011_v40 = vadd.f32 %v991_v50, %v959_v22 }
 0x233   : > { %v1041_v51 = vpop.permute.xlu0 %1040 }
 0x234   : > { %v1062_v39 = vadd.f32 %v1041_v51, %v1010_v59 }
 0x235   : > { %v999_v49 = vpop.permute.xlu1 %998 }
 0x236   : > { %1071 = vst.msk [vmem:[%s2138_s24 + $0x10] sm:$0xff] %vm1068_vm8, %v1062_v39  ;;  %v1015_v6 = vadd.f32 %v999_v49, %v963_v16 }
 0x237   : > { %v1049_v33 = vpop.permute.xlu0 %1048 }
 0x238   : > { %v1066_v20 = vadd.f32 %v1049_v33, %v1014_v35 }
 0x239   : > { %v1043_v45 = vpop.permute.xlu1 %1042 }
 0x23a   : > { %1075 = vst.msk [vmem:[%s2138_s24 + $0x30] sm:$0xff] %vm1068_vm8, %v1066_v20  ;;  %v1063_v8 = vadd.f32 %v1043_v45, %v1011_v40 }
 0x23c   : > { %1072 = vst.msk [vmem:[%s2138_s24 + $0x18] sm:$0xff] %vm1068_vm8, %v1063_v8 }
 0x23d   : > { %v1051_v62 = vpop.permute.xlu1 %1050 }
 0x23e   : > { %v1067_v42 = vadd.f32 %v1051_v62, %v1015_v6 }
 0x240   : > { %1076 = vst.msk [vmem:[%s2138_s24 + $0x38] sm:$0xff] %vm1068_vm8, %v1067_v42 }
 0x241   : > { %1267 = shalt.err (!%p1264_p3)
}
 0x242   : > { %s1268_s6 = scalar_lea.hbm %s2167_s29, 1024  ;;  %s1272_s14 = scalar_lea.hbm %s2218_s2, 2048 }
 0x243   : > { %p1269_p4 = scmp.ne.s32.totalorder %s2167_s29, %s1268_s6  ;;  %p1273_p9 = scmp.lt.u32.totalorder %s2167_s29, %s2218_s2 }
 0x244   : > { %p1274_p10 = scmp.lt.u32.totalorder %s1272_s14, %s1268_s6  ;;  %p1276_p12 = scmp.lt.u32.totalorder %s1268_s6, %s2167_s29 }
 0x245   : > { %p1270_p7 = pnand %p1269_p4, %p1382_p5 }
 0x246   : > { %p1275_p11 = por %p1274_p10, %p1273_p9 }
 0x247   : > { %p1271_p8 = pneg %p1270_p7 }
 0x248   : > { %p1277_p13 = por %p1276_p12, %p1275_p11 }
 0x24a   : > { %p1278_p0 = pnand %p1277_p13, %p1271_p8 }
 0x24c   : > { %1281 = shalt.err (!%p1278_p0)
}
 0x24d   : > { %s1327_s21 = smov 128   ;;  %s1328_s22 = smov 8  }
 0x24e   : > { %1191 = dma.vmem_to_hbm [thread:$0]  (%p1382_p5), %s2169_s26, 1024, %s2167_s29, %s2175_s13, %s1327_s21, %s1327_s21, %s1328_s22  }
 0x24f PF: > { %p1197_p1 = scmp.ge.s32.totalorder %s1316_s12, 2  ;;  %s1106_s23 = sand.u32 1, %s1304_s9  }
 0x250   : > { %s1107_s24 = scalar_lea.sflag [#allocation3], %s1106_s23 }
 0x251   : > { %p1194_p2 = pnand %p1197_p1, %p1386_p6 }
 0x253   : > { %1299 = dma.done.wait (!%p1194_p2), %s1107_s24, 1024  }
 0x254   : > { %1301 = vsyncadd (!%p1194_p2), %s1107_s24, 4294966272  ;;  %p12_p3 = scmp.ge.s32.totalorder %s1369_s15, 4   ;;  %s2308_s9 = smov %s1308_s10 }
 0x255   : > { %s2309_s10 = smov %s1312_s11  ;;  %s2310_s11 = smov %s1380_s18 }
 0x256   : > { %s2311_s12 = smov %s1369_s15  ;;  %14 = sbr.rel (!%p12_p3) target bundleno = 3 (0x3), region = 63 }
 0x25d   :  { %1112 = vsyncpa [#allocation3], 1 }
 0x25e   :  { %1114 = vsyncpa [#allocation3 + $0x1], 1 }

</bundles_post_ra>
